<compile_context>
chip_gen: v5e
topology: v5e:2x2
jax: 0.10.0
libtpu: 0.0.40
codegen_flags: <defaults>
</compile_context>

<pallas_src>
import jax
import jax.numpy as jnp
from jax import lax
from jax.experimental import pallas as pl
from jax.experimental.pallas import tpu as pltpu


# ---------------------------------------------------------------------------
# Pallas kernel: one image-group step of the fused MBConv
# ---------------------------------------------------------------------------
def _fuse_mv_kernel(x_ref, w1_ref, b1_ref, w2_ref, b2_ref, o_ref):
    # x_ref : (G, H, W*Cin)          f32 image group (lane-fused NHWC slab)
    # w1_ref: (3*W*Cin, W*Cexp)      bf16 banded conv1 weights (BN1 scale folded;
    #                                kw taps + 'SAME' padding along W baked in)
    # b1_ref: (1, W*Cexp)            f32 BN1 bias tiled over W
    # w2_ref: (W*Cexp, W*Cout)       bf16 block-diagonal 1x1 conv (BN2 folded)
    # b2_ref: (1, W*Cout)            f32 BN2 bias tiled over W
    # o_ref : (G, H, W*Cout)         lane-dense output slab (>=128 lanes)
    G, H, WC = x_ref.shape
    WO = o_ref.shape[2]

    x = x_ref[...]                                            # (G, H, WC) f32

    # Vertical 3-tap halo from the resident slab via static sublane shifts.
    # The zero boundary row implements 'SAME' padding along H, per image, so
    # grouped images never borrow rows from their neighbours.
    zrow = jnp.zeros((G, 1, WC), x.dtype)
    x_dn = jnp.concatenate([zrow, x[:, :-1, :]], axis=1)      # row r-1  (kh=0)
    x_up = jnp.concatenate([x[:, 1:, :], zrow], axis=1)       # row r+1  (kh=2)

    # Fuse the three kh taps into one matmul: M = G*H, K = 3*W*Cin.
    xcat = jnp.concatenate([x_dn, x, x_up], axis=2)           # (G, H, 3*WC)
    xcat = xcat.reshape(G * H, 3 * WC).astype(w1_ref.dtype)   # bf16 MXU operand

    acc = jnp.dot(xcat, w1_ref[...], preferred_element_type=jnp.float32)
    h1 = jnp.maximum(acc + b1_ref[...], 0.0)                  # BN1 bias + ReLU (f32)

    y = jnp.dot(h1.astype(w2_ref.dtype), w2_ref[...],
                preferred_element_type=jnp.float32)
    y = y + b2_ref[...]                                       # BN2 bias (f32)
    o_ref[...] = y.reshape(G, H, WO).astype(o_ref.dtype)      # full-lane store


# ---------------------------------------------------------------------------
# Wrapper-side parameter packing (BN folding + banded / block-diag weights)
# ---------------------------------------------------------------------------
def pack_fuse_conv_params(w1_hwio, scale1, bias1, w2_io, scale2, bias2, width):
    """Fold BN scales into the conv weights and pre-bake the lane-fused,
    banded weight matrices consumed by the kernel."""
    K = w1_hwio.shape[0]
    assert K == 3, "FuseMvConvBlock uses a fixed 3x3 first conv"
    c_in, c_exp = w1_hwio.shape[2], w1_hwio.shape[3]
    c_out = w2_io.shape[1]

    w1f = (w1_hwio * scale1).astype(jnp.float32)        # fold BN1 scale (per c_exp)
    w2f = (w2_io * scale2).astype(jnp.float32)          # fold BN2 scale (per c_out)

    # sel[kw, w_in, w_out] = 1 iff w_in == w_out + (kw - 1); out-of-range taps
    # have no entry -> 'SAME' zero padding along W is baked into the band.
    sel = jnp.stack([jnp.eye(width, k=1 - kw, dtype=jnp.float32)
                     for kw in range(K)])
    # rows: kh*(W*Cin) + w_in*Cin + ci ; cols: w_out*Cexp + ce
    w1big = jnp.einsum("kab,hkie->haibe", sel, w1f)
    w1big = w1big.reshape(K * width * c_in, width * c_exp)

    # Block-diagonal 1x1 conv: rows w*Cexp + ce ; cols w*Cout + co
    w2big = jnp.einsum("ab,eo->aebo", jnp.eye(width, dtype=jnp.float32), w2f)
    w2big = w2big.reshape(width * c_exp, width * c_out)

    b1big = jnp.tile(bias1, width).reshape(1, width * c_exp).astype(jnp.float32)
    b2big = jnp.tile(bias2, width).reshape(1, width * c_out).astype(jnp.float32)

    return (w1big.astype(jnp.bfloat16), b1big,
            w2big.astype(jnp.bfloat16), b2big)


# ---------------------------------------------------------------------------
# Pallas entry point (NHWC, lane-fused layout)
# ---------------------------------------------------------------------------
def fuse_conv_pallas_nhwc(x_nhwc, packed, c_out, *, target_m=256):
    N, H, W, c_in = x_nhwc.shape
    w1big, b1big, w2big, b2big = packed
    WC = W * c_in
    WE = w1big.shape[1]
    WO = W * c_out
    assert w1big.shape[0] == 3 * WC

    # Group whole images per grid step so the conv1 matmul M (= G*H) grows
    # toward the MXU height, while keeping >= 2 "parallel" grid steps when the
    # batch allows so both v7x TensorCores receive work.
    G = max(1, min(N, max(1, target_m // H)))
    while G > 1 and (N % G != 0 or N // G < 2):
        G -= 1
    grid = (N // G,)

    # Free reshape of the contiguous NHWC array to the lane-fused slab; the
    # bf16 cast of the activation happens inside the kernel (no extra HBM pass).
    x2d = x_nhwc.reshape(N, H, WC)

    out2d = pl.pallas_call(
        _fuse_mv_kernel,
        out_shape=jax.ShapeDtypeStruct((N, H, WO), x_nhwc.dtype),
        grid=grid,
        in_specs=[
            pl.BlockSpec((G, H, WC), lambda n: (n, 0, 0)),       # image group
            pl.BlockSpec((3 * WC, WE), lambda n: (0, 0)),        # resident weights
            pl.BlockSpec((1, WE), lambda n: (0, 0)),
            pl.BlockSpec((WE, WO), lambda n: (0, 0)),
            pl.BlockSpec((1, WO), lambda n: (0, 0)),
        ],
        out_specs=pl.BlockSpec((G, H, WO), lambda n: (n, 0, 0)),
        compiler_params=pltpu.CompilerParams(
            dimension_semantics=("parallel",)),
    )(x2d, w1big, b1big, w2big, b2big)
    return out2d.reshape(N, H, W, c_out)


# ---------------------------------------------------------------------------
# Module wrapper (reproduces FuseMvConvBlock.forward, NCHW interface)
# ---------------------------------------------------------------------------
def fuse_mv_conv_block(x_nchw, packed_params, *, in_channels, out_channels, stride):
    skip_connection = (stride == 1 and in_channels == out_channels)
    if skip_connection:
        # Faithful to the PyTorch forward: `result = self.drop_connect(x);
        # result += x` overwrites the fuse_conv output, so the conv (and the
        # layout transposes) are dead work on this path.  DropConnect is
        # identity at inference.  # TODO(synk): DropConnect definition missing.
        return x_nchw + x_nchw
    assert stride == 1, "Pallas kernel implemented for stride == 1"
    x_nhwc = jnp.transpose(x_nchw, (0, 2, 3, 1))
    y_nhwc = fuse_conv_pallas_nhwc(x_nhwc, packed_params, out_channels)
    return jnp.transpose(y_nhwc, (0, 3, 1, 2))


# ---------------------------------------------------------------------------
# Pure-JAX references for verification
# ---------------------------------------------------------------------------
def reference_fuse_conv_f32(x_nhwc, w1, scale1, bias1, w2, scale2, bias2):
    """Full f32 conv -> BN -> ReLU -> conv -> BN path (no folding, no bf16)."""
    dn = ("NHWC", "HWIO", "NHWC")
    y = lax.conv_general_dilated(x_nhwc, w1, (1, 1), "SAME",
                                 dimension_numbers=dn)
    y = y * scale1 + bias1
    y = jnp.maximum(y, 0.0)
    c_exp, c_out = w2.shape
    y = lax.conv_general_dilated(y, w2.reshape(1, 1, c_exp, c_out), (1, 1),
                                 "SAME", dimension_numbers=dn)
    return y * scale2 + bias2


def reference_fuse_conv_bf16(x_nhwc, w1, scale1, bias1, w2, scale2, bias2):
    """Same math the kernel evaluates (folded BN scales, bf16 MXU operands,
    f32 accumulation) expressed with lax convs -- tight structural check."""
    f32 = jnp.float32
    rt = lambda a: a.astype(jnp.bfloat16).astype(f32)    # mimic MXU operand cast
    dn = ("NHWC", "HWIO", "NHWC")
    y = lax.conv_general_dilated(rt(x_nhwc), rt(w1 * scale1), (1, 1), "SAME",
                                 dimension_numbers=dn,
                                 precision=lax.Precision.HIGHEST)
    y = jnp.maximum(y + bias1, 0.0)
    c_exp, c_out = w2.shape
    y = lax.conv_general_dilated(rt(y),
                                 rt((w2 * scale2).reshape(1, 1, c_exp, c_out)),
                                 (1, 1), "SAME", dimension_numbers=dn,
                                 precision=lax.Precision.HIGHEST)
    return y + bias2


if __name__ == "__main__":
    # Config: in=4, out=8, expansion=4 -> expand=16, stride=1, H=W=16
    # (in != out -> no skip connection, so the fused conv path is returned)
    N, Cin, H, W = 2, 4, 16, 16
    expansion = 4
    Cout = 8
    Cexp = Cin * expansion
    K = 3
    eps = 1e-5

    key = jax.random.PRNGKey(0)
    keys = jax.random.split(key, 10)

    x = jax.random.normal(keys[0], (N, Cin, H, W), jnp.float32)       # NCHW

    # Conv weights (synthetic, deterministic), stored HWIO / IO.
    w1 = jax.random.normal(keys[1], (K, K, Cin, Cexp), jnp.float32) * 0.2
    w2 = jax.random.normal(keys[2], (Cexp, Cout), jnp.float32) * 0.2

    # BatchNorm parameters (inference-mode running stats) -> scale / bias.
    gamma1 = 1.0 + 0.1 * jax.random.normal(keys[3], (Cexp,), jnp.float32)
    beta1 = 0.1 * jax.random.normal(keys[4], (Cexp,), jnp.float32)
    mean1 = 0.1 * jax.random.normal(keys[5], (Cexp,), jnp.float32)
    var1 = 0.5 + jax.random.uniform(keys[6], (Cexp,), jnp.float32)
    gamma2 = 1.0 + 0.1 * jax.random.normal(keys[7], (Cout,), jnp.float32)
    beta2 = 0.1 * jax.random.normal(keys[8], (Cout,), jnp.float32)
    mean2 = 0.1 * jax.random.normal(keys[9], (Cout,), jnp.float32)
    var2 = jnp.linspace(0.5, 1.5, Cout, dtype=jnp.float32)

    scale1 = gamma1 / jnp.sqrt(var1 + eps)
    bias1 = beta1 - mean1 * scale1
    scale2 = gamma2 / jnp.sqrt(var2 + eps)
    bias2 = beta2 - mean2 * scale2

    packed = pack_fuse_conv_params(w1, scale1, bias1, w2, scale2, bias2, W)

    out = fuse_mv_conv_block(x, packed, in_channels=Cin,
                             out_channels=Cout, stride=1)
    out = jax.block_until_ready(out)
    assert out.shape == (N, Cout, H, W)

    x_nhwc = jnp.transpose(x, (0, 2, 3, 1))
    out_nhwc = jnp.transpose(out, (0, 2, 3, 1))

    # 1) Tight structural check vs. a reference using the same folded weights /
    #    bf16 operand rounding (residual differences: f32 accumulation order).
    ref_t = reference_fuse_conv_bf16(x_nhwc, w1, scale1, bias1, w2, scale2, bias2)
    err_t = float(jnp.max(jnp.abs(out_nhwc - ref_t)))
    assert jnp.allclose(out_nhwc, ref_t, rtol=2e-3, atol=2e-3), err_t

    # 2) Loose end-to-end check vs. the full-f32 conv/BN path; this bounds the
    #    bf16 quantization error introduced by using the MXU bf16 datapath.
    ref_f = reference_fuse_conv_f32(x_nhwc, w1, scale1, bias1, w2, scale2, bias2)
    err_f = float(jnp.max(jnp.abs(out_nhwc - ref_f)))
    assert jnp.allclose(out_nhwc, ref_f, rtol=5e-2, atol=1e-1), err_f

    print("KERNEL_OK")
</pallas_src>

<mosaic_0001>
module attributes {stable_mosaic.version = 11 : i64} {
  func.func @_fuse_mv_kernel(%arg0: i32, %arg1: memref<1x16x64xf32, #tpu.memory_space<vmem>>, %arg2: memref<192x256xbf16, #tpu.memory_space<vmem>>, %arg3: memref<1x256xf32, #tpu.memory_space<vmem>>, %arg4: memref<256x128xbf16, #tpu.memory_space<vmem>>, %arg5: memref<1x128xf32, #tpu.memory_space<vmem>>, %arg6: memref<1x16x128xf32, #tpu.memory_space<vmem>>) attributes {dimension_semantics = [#tpu.dimension_semantics<parallel>], iteration_bounds = array<i64: 2>, scalar_prefetch = 0 : i64, scratch_operands = 0 : i64, tpu.core_type = #tpu.core_type<tc>, window_params = [{transform_indices = @transform_0, window_bounds = array<i64: 1, 16, 64>}, {pipeline_mode = #tpu.pipeline_mode<synchronous>, transform_indices = @transform_1, window_bounds = array<i64: 192, 256>}, {pipeline_mode = #tpu.pipeline_mode<synchronous>, transform_indices = @transform_2, window_bounds = array<i64: 1, 256>}, {pipeline_mode = #tpu.pipeline_mode<synchronous>, transform_indices = @transform_3, window_bounds = array<i64: 256, 128>}, {pipeline_mode = #tpu.pipeline_mode<synchronous>, transform_indices = @transform_4, window_bounds = array<i64: 1, 128>}, {transform_indices = @transform_5, window_bounds = array<i64: 1, 16, 128>}]} {
    %c0 = arith.constant 0 : index
    %c0_0 = arith.constant 0 : index
    %c0_1 = arith.constant 0 : index
    %0 = vector.load %arg1[%c0, %c0_0, %c0_1] : memref<1x16x64xf32, #tpu.memory_space<vmem>>, vector<1x16x64xf32>
    %cst = arith.constant 0.000000e+00 : f32
    %1 = vector.broadcast %cst : f32 to vector<1x1x64xf32>
    %2 = vector.extract_strided_slice %0 {offsets = [0, 0, 0], sizes = [1, 15, 64], strides = [1, 1, 1]} : vector<1x16x64xf32> to vector<1x15x64xf32>
    %3 = tpu.concatenate %1, %2 in 1 : vector<1x1x64xf32>, vector<1x15x64xf32> -> vector<1x16x64xf32>
    %4 = vector.extract_strided_slice %0 {offsets = [0, 1, 0], sizes = [1, 15, 64], strides = [1, 1, 1]} : vector<1x16x64xf32> to vector<1x15x64xf32>
    %5 = tpu.concatenate %4, %1 in 1 : vector<1x15x64xf32>, vector<1x1x64xf32> -> vector<1x16x64xf32>
    %6 = tpu.concatenate %3, %0, %5 in 2 : vector<1x16x64xf32>, vector<1x16x64xf32>, vector<1x16x64xf32> -> vector<1x16x192xf32>
    %7 = vector.shape_cast %6 : vector<1x16x192xf32> to vector<16x192xf32>
    %8 = arith.truncf %7 : vector<16x192xf32> to vector<16x192xbf16>
    %c0_2 = arith.constant 0 : index
    %c0_3 = arith.constant 0 : index
    %9 = vector.load %arg2[%c0_2, %c0_3] : memref<192x256xbf16, #tpu.memory_space<vmem>>, vector<192x256xbf16>
    %cst_4 = arith.constant dense<0.000000e+00> : vector<16x256xf32>
    %10 = tpu.matmul %8, %9, %cst_4 {dimension_numbers = #tpu.dot_dimension_numbers<[1], [0], [0], [1], [0, 0, 1, 1], [], []>} : vector<16x192xbf16>, vector<192x256xbf16>, vector<16x256xf32> -> vector<16x256xf32>
    %c0_5 = arith.constant 0 : index
    %c0_6 = arith.constant 0 : index
    %11 = vector.load %arg3[%c0_5, %c0_6] : memref<1x256xf32, #tpu.memory_space<vmem>>, vector<1x256xf32>
    %12 = vector.broadcast %11 : vector<1x256xf32> to vector<16x256xf32>
    %13 = arith.addf %10, %12 : vector<16x256xf32>
    %cst_7 = arith.constant 0.000000e+00 : f32
    %14 = vector.broadcast %cst_7 : f32 to vector<16x256xf32>
    %15 = arith.maximumf %13, %14 : vector<16x256xf32>
    %16 = arith.truncf %15 : vector<16x256xf32> to vector<16x256xbf16>
    %c0_8 = arith.constant 0 : index
    %c0_9 = arith.constant 0 : index
    %17 = vector.load %arg4[%c0_8, %c0_9] : memref<256x128xbf16, #tpu.memory_space<vmem>>, vector<256x128xbf16>
    %cst_10 = arith.constant dense<0.000000e+00> : vector<16x128xf32>
    %18 = tpu.matmul %16, %17, %cst_10 {dimension_numbers = #tpu.dot_dimension_numbers<[1], [0], [0], [1], [0, 0, 1, 1], [], []>} : vector<16x256xbf16>, vector<256x128xbf16>, vector<16x128xf32> -> vector<16x128xf32>
    %c0_11 = arith.constant 0 : index
    %c0_12 = arith.constant 0 : index
    %19 = vector.load %arg5[%c0_11, %c0_12] : memref<1x128xf32, #tpu.memory_space<vmem>>, vector<1x128xf32>
    %20 = vector.broadcast %19 : vector<1x128xf32> to vector<16x128xf32>
    %21 = arith.addf %18, %20 : vector<16x128xf32>
    %22 = vector.shape_cast %21 : vector<16x128xf32> to vector<1x16x128xf32>
    %c0_13 = arith.constant 0 : index
    %c0_14 = arith.constant 0 : index
    %c0_15 = arith.constant 0 : index
    %23 = vector.load %arg6[%c0_13, %c0_14, %c0_15] : memref<1x16x128xf32, #tpu.memory_space<vmem>>, vector<1x16x128xf32>
    tpu.vector_store %arg6[%c0_13, %c0_14, %c0_15], %22 {strides = array<i32>} : memref<1x16x128xf32, #tpu.memory_space<vmem>>, vector<1x16x128xf32>,
    return
  }
  func.func @transform_0(%arg0: i32) -> (i32, i32, i32) {
    %c0_i32 = arith.constant 0 : i32
    %c0_i32_0 = arith.constant 0 : i32
    %c0_i32_1 = arith.constant 0 : i32
    return %arg0, %c0_i32, %c0_i32_0 : i32, i32, i32
  }
  func.func @transform_1(%arg0: i32) -> (i32, i32) {
    %c0_i32 = arith.constant 0 : i32
    %c0_i32_0 = arith.constant 0 : i32
    %c0_i32_1 = arith.constant 0 : i32
    return %c0_i32, %c0_i32_0 : i32, i32
  }
  func.func @transform_2(%arg0: i32) -> (i32, i32) {
    %c0_i32 = arith.constant 0 : i32
    %c0_i32_0 = arith.constant 0 : i32
    %c0_i32_1 = arith.constant 0 : i32
    return %c0_i32, %c0_i32_0 : i32, i32
  }
  func.func @transform_3(%arg0: i32) -> (i32, i32) {
    %c0_i32 = arith.constant 0 : i32
    %c0_i32_0 = arith.constant 0 : i32
    %c0_i32_1 = arith.constant 0 : i32
    return %c0_i32, %c0_i32_0 : i32, i32
  }
  func.func @transform_4(%arg0: i32) -> (i32, i32) {
    %c0_i32 = arith.constant 0 : i32
    %c0_i32_0 = arith.constant 0 : i32
    %c0_i32_1 = arith.constant 0 : i32
    return %c0_i32, %c0_i32_0 : i32, i32
  }
  func.func @transform_5(%arg0: i32) -> (i32, i32, i32) {
    %c0_i32 = arith.constant 0 : i32
    %c0_i32_0 = arith.constant 0 : i32
    %c0_i32_1 = arith.constant 0 : i32
    return %arg0, %c0_i32, %c0_i32_0 : i32, i32, i32
  }
}

</mosaic_0001>

<bundles_post_ra>
// kernel: tpu_custom_call.1
= control target key start
LH: loop header
LB: loop body
LE: loop exit
PB: predicated region body
PF: predicated region fallthrough
CT: control target
= control target key end

     0   :  { %10 = vsyncpa [#allocation3], 0  ;;  %s1555_s0 = inlined_call_operand.hbm [shape: f32[2,16,64], index: 0, kind: input, shape index: {}]   ;;  %s1556_s1 = inlined_call_operand.hbm [shape: bf16[192,256], index: 1, kind: input, shape index: {}]   ;;  %s1557_s2 = inlined_call_operand.hbm [shape: f32[1,256], index: 2, kind: input, shape index: {}]   ;;  %s1558_s3 = inlined_call_operand.hbm [shape: bf16[256,128], index: 3, kind: input, shape index: {}]   ;;  %s1559_s4 = inlined_call_operand.vmem [shape: f32[1,128], index: 4, kind: input, shape index: {}]   ;;  %s1560_s5 = inlined_call_operand.hbm [shape: f32[2,16,128], index: 5, kind: output, shape index: {}]  }
   0x1   :  { %12 = vsyncpa [#allocation3 + $0x1], 0 }
   0x2   :  { %13 = vsyncpa [#allocation6], 0 }
   0x3   :  { %14 = vsyncpa [#allocation9], 0 }
   0x4   :  { %15 = vsyncpa [#allocation4], 0 }
   0x5   :  { %17 = vsyncpa [#allocation4 + $0x1], 0  ;;  %s1368_s18 = smov 0   ;;  %s1370_s19 = smov 0  }
   0x6   :  { %s1372_s20 = smov 0   ;;  %s1374_s21 = smov 0  }
   0x7 LB: > { %s1389_s22 = sadd.s32 4294967295, %s1326_s21   ;;  %s818_s23 = sadd.s32 4294967294, %s1326_s21   ;;  %s1326_s21 = sphi %s1374_s21, %s1573_s21   ;;  %s1322_s20 = sphi %s1372_s20, %s1572_s20   ;;  %s1318_s19 = sphi %s1370_s19, %s1571_s19   ;;  %s1314_s18 = sphi %s1368_s18, %s1570_s18  }
   0x8   : > { %p43_p0 = scmp.ne.s32.totalorder %s1318_s19, %s1314_s18  ;;  %p44_p1 = scmp.eq.s32.totalorder %s1389_s22, 0 }
   0x9   : > { %p151_p2 = scmp.eq.s32.totalorder %s1389_s22, 1  ;;  %p157_p3 = scmp.eq.s32.totalorder %s818_s23, 1 }
   0xa   : > { %p1398_p4 = por %p44_p1, %p43_p0  ;;  %p819_p5 = scmp.ge.s32.totalorder %s1326_s21, 1 }
   0xb   : > { %p1403_p6 = por %p157_p3, %p43_p0  ;;  %p164_p7 = scmp.lt.s32.totalorder %s1326_s21, 3 }
   0xc   : > { %s175_s28 = sshll.u32 %s1556_s1, 4  ;;  %s1328_s30 = smov [#allocation5]   ;;  %s176_s28 = int_to_ptr.hbm [resolvable:$true] %s175_s28 }
   0xd   : > { %p1411_p8 = pnand %p819_p5, %p164_p7  ;;  %s177_s6 = sshll.u32 %s1328_s30, 4  ;;  %s178_s6 = int_to_ptr.vmem [resolvable:$true] %s177_s6 }
   0xe   : > { %s190_s10 = sshll.u32 %s1557_s2, 4  ;;  %s1561_s11 = smov 128   ;;  %s191_s10 = int_to_ptr.hbm [resolvable:$true] %s190_s10 }
   0xf   : > { %p1058_p9 = pneg %p1411_p8  ;;  %s1330_s12 = smov 8  }
  0x10   : > { %s1331_s13 = smov [#allocation7]   ;;  %s201_s17 = sshll.u32 %s1558_s3, 4  ;;  %s202_s17 = int_to_ptr.hbm [resolvable:$true] %s201_s17 }
  0x11   : > { %p1419_p10 = pnand %p1058_p9, %p44_p1  ;;  %s192_s14 = sshll.u32 %s1331_s13, 4  ;;  %s193_s14 = int_to_ptr.vmem [resolvable:$true] %s192_s14 }
  0x12   : > { %s1332_s23 = smov [#allocation8]   ;;  %s1333_s27 = smov 64  }
  0x13   : > { %1061 = dma.hbm_to_vmem [thread:$0]  (!%p1419_p10), %s176_s28, 3072, %s178_s6, [#allocation6], %s1561_s11, %s1561_s11, %s1330_s12  }
  0x14   : > { %1064 = dma.hbm_to_vmem [thread:$0]  (!%p1419_p10), %s191_s10, 32, %s193_s14, [#allocation6]  }
  0x15   : > { %s203_s26 = sshll.u32 %s1332_s23, 4  ;;  %s1334_s28 = smov 4   ;;  %s204_s26 = int_to_ptr.vmem [resolvable:$true] %s203_s26 }
  0x16   : > { %1067 = dma.hbm_to_vmem [thread:$0]  (!%p1419_p10), %s202_s17, 2048, %s204_s26, [#allocation9], %s1333_s27, %s1333_s27, %s1334_s28  }
  0x17   : > { %s1440_s30 = sadd.s32 1, %s1326_s21   ;;  %s30_s8 = sadd.s32 1, %s1322_s20 }
  0x18   : > { %s27_s6 = ssub.s32 %s1326_s21, %s1440_s30  ;;  %p37_p13 = scmp.ne.s32.totalorder %s1322_s20, %s1318_s19 }
  0x19   : > { %p28_p12 = scmp.eq.s32.totalorder %s27_s6, 0  ;;  %p38_p0 = scmp.eq.s32.totalorder %s1326_s21, 0 }
  0x1a   : > { %p1453_p3 = por %p151_p2, %p37_p13  ;;  %p1079_p5 = scmp.lt.s32.totalorder %s1326_s21, 2 }
  0x1b   : > { %s1449_s9 = scalar_select %p28_p12, %s1322_s20, %s30_s8  }
  0x1c   : > { %s220_s13 = sand.u32 1, %s1322_s20   ;;  %s1000_s14 = sshll.u32 %s1326_s21, 4 }
  0x1d   : > { %p39_p7 = por %p38_p0, %p37_p13  ;;  %s824_s7 = sshll.u32 %s220_s13, 4 }
  0x1e   : > { %s229_s17 = scalar_lea.hbm %s1555_s0, %s1000_s14  ;;  %s224_s26 = scalar_lea.vmem [#allocation2], %s824_s7 }
  0x1f   : > { %s230_s23 = sshll.u32 %s229_s17, 4  ;;  %s232_s27 = sshll.u32 %s224_s26, 4  ;;  %s231_s23 = int_to_ptr.hbm [resolvable:$true] %s230_s23  ;;  %s233_s27 = int_to_ptr.vmem [resolvable:$true] %s232_s27 }
  0x20   : > { %p1463_p9 = pnand %p1079_p5, %p39_p7  ;;  %s221_s6 = scalar_lea.sflag [#allocation3], %s220_s13 }
  0x21   : > { %s1222_s8 = sshra.s32 %s231_s23, 4  ;;  %s1229_s7 = scalar_lea.hbm %s1555_s0, 32  ;;  %s1223_s8 = int_to_ptr.hbm [resolvable:$true] %s1222_s8 }
  0x22   : > { %s1224_s11 = scalar_lea.hbm %s1223_s8, 16  ;;  %p1226_p10 = pneg %p1463_p9 }
  0x23   : > { %p1225_p2 = scmp.ne.s32.totalorder %s1223_s8, %s1224_s11  ;;  %p1230_p0 = scmp.lt.s32.totalorder %s1223_s8, %s1555_s0 }
  0x24   : > { %p1231_p5 = scmp.lt.s32.totalorder %s1229_s7, %s1224_s11 }
  0x25   : > { %p1227_p12 = pnand %p1226_p10, %p1225_p2 }
  0x26   : > { %p1232_p7 = por %p1231_p5, %p1230_p0 }
  0x27   : > { %p1228_p13 = pneg %p1227_p12 }
  0x29   : > { %p1233_p11 = pnand %p1232_p7, %p1228_p13 }
  0x2b   : > { %1236 = shalt.err (!%p1233_p11)
}
  0x2c   : > { %s1568_s13 = smov 128   ;;  %244 = sbr.rel (%p1411_p8) target bundleno = 471 (0x1d7), region = 40 }
  0x2d   : > { %1071 = dma.hbm_to_vmem [thread:$0]  (!%p1463_p9), %s231_s23, 256, %s233_s27, %s221_s6, %s1568_s13, %s1568_s13, %s1330_s12  }
  0x2e   : > { %s1483_s26 = sand.u32 (!%p1411_p8), 1, %s1318_s19  }
  0x2f   : > { %s828_s11 = sshll.u32 (!%p1411_p8), %s1483_s26, 4  ;;  %s247_s8 = scalar_lea.sflag (!%p1411_p8), [#allocation3], %s1483_s26 }
  0x30   : > { %s250_s14 = scalar_lea.vmem (!%p1411_p8), [#allocation2], %s828_s11 }
  0x31   : > { %1297 = dma.done.wait (%p1398_p4), %s247_s8, 256  }
  0x32   : > { %1299 = vsyncadd (%p1398_p4), %s247_s8, 4294967040 }
  0x33   : > { %1301 = dma.done.wait (%p44_p1), [#allocation6], 3104  }
  0x34   : > { %1303 = vsyncadd (%p44_p1), [#allocation6], 4294964192 }
  0x35   : > { %1305 = dma.done.wait (%p44_p1), [#allocation9], 2048  }
  0x36   : > { %1307 = vsyncadd (%p44_p1), [#allocation9], 4294965248  ;;  %v1501_v0 = vld [vmem:[%s250_s14] sm:$0xff]  ;;  %v1503_v1 = vld [vmem:[%s250_s14 + $0x8] sm:$0xff]  ;;  %s1335_s24 = smov 64   ;;  %vm305_vm0 = vcmask 1046528  }
  0x37   : > { %v891_v2 = vld [vmem:[#allocation5 + $0x70] sm:$0xf]  ;;  %v1126_v3 = vpack.i.bf16 %v1503_v1, %v1501_v0  ;;  %v1016_v4 = vld [vmem:[#allocation5 + $0x74] sm:$0xf0]  ;;  %v1015_v6 = vld [vmem:[#allocation5 + $0x74] sm:$0xf] }
  0x38   : > { %v892_v5 = vor.u32 %v1016_v4, %v891_v2  ;;  %v893_v7 = vld [vmem:[#allocation5 + $0x78] sm:$0xf0]  ;;  %v883_v9 = vld [vmem:[#allocation5 + $0x60] sm:$0xf]  ;;  %v1014_v10 = vld [vmem:[#allocation5 + $0x64] sm:$0xf0] }
  0x39   : > { %1127 = vrot.lane.b32.xlu0 %v1126_v3, %s1335_s24  ;;  %v896_v8 = vor.u32 %v1015_v6, %v893_v7  ;;  %v1013_v11 = vld [vmem:[#allocation5 + $0x64] sm:$0xf]  ;;  %v884_v12 = vor.u32 %v1014_v10, %v883_v9  ;;  %v885_v13 = vld [vmem:[#allocation5 + $0x68] sm:$0xf0]  ;;  %v875_v15 = vld [vmem:[#allocation5 + $0x50] sm:$0xf] }
  0x3a   : > { %476 = vmatpush.bf16.msra.mxu0 %v892_v5  ;;  %v888_v14 = vor.u32 %v1013_v11, %v885_v13  ;;  %v1012_v16 = vld [vmem:[#allocation5 + $0x54] sm:$0xf0]  ;;  %v1023_v17 = vld [vmem:[#allocation5 + $0xb4] sm:$0xf]  ;;  %v877_v19 = vld [vmem:[#allocation5 + $0x58] sm:$0xf0] }
  0x3b   : > { %504 = vmatpush.bf16.msra.mxu2 %v896_v8  ;;  %v1011_v18 = vld [vmem:[#allocation5 + $0x54] sm:$0xf]  ;;  %v925_v20 = vld [vmem:[#allocation5 + $0xb8] sm:$0xf0]  ;;  %v1021_v22 = vld [vmem:[#allocation5 + $0xa4] sm:$0xf]  ;;  %v876_v23 = vor.u32 %v1012_v16, %v875_v15 }
  0x3c   : > { %v928_v21 = vor.u32 %v1023_v17, %v925_v20  ;;  %v867_v24 = vld [vmem:[#allocation5 + $0x40] sm:$0xf]  ;;  %v1010_v25 = vld [vmem:[#allocation5 + $0x44] sm:$0xf0]  ;;  %v917_v26 = vld [vmem:[#allocation5 + $0xa8] sm:$0xf0]  ;;  %v880_v27 = vor.u32 %v1011_v18, %v877_v19 }
  0x3d   : > { %v1009_v28 = vld [vmem:[#allocation5 + $0x44] sm:$0xf]  ;;  %v869_v29 = vld [vmem:[#allocation5 + $0x48] sm:$0xf0]  ;;  %v920_v30 = vor.u32 %v1021_v22, %v917_v26  ;;  %v923_v31 = vld [vmem:[#allocation5 + $0xb0] sm:$0xf]  ;;  %v868_v36 = vor.u32 %v1010_v25, %v867_v24 }
  0x3e   : > { %477 = vmatpush.bf16.msra.mxu0 %v884_v12  ;;  %522 = vmatpush.bf16.msra.mxu3 %v928_v21  ;;  %v1024_v32 = vld [vmem:[#allocation5 + $0xb4] sm:$0xf0]  ;;  %v1019_v33 = vld [vmem:[#allocation5 + $0x94] sm:$0xf]  ;;  %v909_v34 = vld [vmem:[#allocation5 + $0x98] sm:$0xf0]  ;;  %v872_v39 = vor.u32 %v1009_v28, %v869_v29 }
  0x3f   : > { %505 = vmatpush.bf16.msra.mxu2 %v888_v14  ;;  %v924_v35 = vor.u32 %v1024_v32, %v923_v31  ;;  %v915_v37 = vld [vmem:[#allocation5 + $0xa0] sm:$0xf]  ;;  %v1022_v38 = vld [vmem:[#allocation5 + $0xa4] sm:$0xf0]  ;;  %v859_v40 = vld [vmem:[#allocation5 + $0x30] sm:$0xf]  ;;  %v912_v43 = vor.u32 %v1019_v33, %v909_v34 }
  0x40   : > { %v1008_v41 = vld [vmem:[#allocation5 + $0x34] sm:$0xf0]  ;;  %v1007_v42 = vld [vmem:[#allocation5 + $0x34] sm:$0xf]  ;;  %v861_v44 = vld [vmem:[#allocation5 + $0x38] sm:$0xf0]  ;;  %v916_v45 = vor.u32 %v1022_v38, %v915_v37 }
  0x41   : > { %494 = vmatpush.bf16.msra.mxu1 %v924_v35  ;;  %v1017_v46 = vld [vmem:[#allocation5 + $0x84] sm:$0xf]  ;;  %v901_v47 = vld [vmem:[#allocation5 + $0x88] sm:$0xf0]  ;;  %v860_v48 = vor.u32 %v1008_v41, %v859_v40  ;;  %v864_v49 = vor.u32 %v1007_v42, %v861_v44  ;;  %v851_v50 = vld [vmem:[#allocation5 + $0x20] sm:$0xf] }
  0x42   : > { %478 = vmatpush.bf16.msra.mxu0 %v876_v23  ;;  %523 = vmatpush.bf16.msra.mxu3 %v920_v30  ;;  %v1006_v51 = vld [vmem:[#allocation5 + $0x24] sm:$0xf0]  ;;  %v904_v52 = vor.u32 %v1017_v46, %v901_v47  ;;  %v1005_v53 = vld [vmem:[#allocation5 + $0x24] sm:$0xf]  ;;  %v853_v54 = vld [vmem:[#allocation5 + $0x28] sm:$0xf0] }
  0x43   : > { %506 = vmatpush.bf16.msra.mxu2 %v880_v27  ;;  %v852_v55 = vor.u32 %v1006_v51, %v851_v50  ;;  %v856_v56 = vor.u32 %v1005_v53, %v853_v54  ;;  %v843_v57 = vld [vmem:[#allocation5 + $0x10] sm:$0xf]  ;;  %v1004_v58 = vld [vmem:[#allocation5 + $0x14] sm:$0xf0]  ;;  %v1003_v59 = vld [vmem:[#allocation5 + $0x14] sm:$0xf] }
  0x44   : > { %v845_v60 = vld [vmem:[#allocation5 + $0x18] sm:$0xf0]  ;;  %v844_v61 = vor.u32 %v1004_v58, %v843_v57  ;;  %v307_v63 = vrot.slane %v1503_v1, 1  ;;  %v306_v2 = vrot.slane %v1501_v0, 1  ;;  %v907_v6 = vld [vmem:[#allocation5 + $0x90] sm:$0xf] }
  0x45   : > { %495 = vmatpush.bf16.msra.mxu1 %v916_v45  ;;  %v848_v62 = vor.u32 %v1003_v59, %v845_v60  ;;  %v1020_v7 = vld [vmem:[#allocation5 + $0x94] sm:$0xf0]  ;;  %v300_v8 = vrot.slane %v1503_v1, 7  ;;  %v299_v9 = vrot.slane %v1501_v0, 7  ;;  %vm318_vm1 = vcmask 523264   ;;  %v1030_v23 = vld [vmem:[#allocation8 + $0x28] sm:$0xff] }
  0x46   : > { %479 = vmatpush.bf16.msra.mxu0 %v868_v36  ;;  %524 = vmatpush.bf16.msra.mxu3 %v912_v43  ;;  %v308_v3 = vsel %vm305_vm0, %v306_v2, %v307_v63  ;;  %v311_v4 = vsel %vm305_vm0, %v307_v63, 0.0  ;;  %v908_v10 = vor.u32 %v1020_v7, %v907_v6  ;;  %v835_v11 = vld [vmem:[#allocation5] sm:$0xf]  ;;  %v1002_v12 = vld [vmem:[#allocation5 + $0x4] sm:$0xf0]  ;;  %vm298_vm2 = vcmask 1040384  }
  0x47   : > { %507 = vmatpush.bf16.msra.mxu2 %v872_v39  ;;  %v322_v5 = vpack.c.bf16 %v311_v4, %v308_v3  ;;  %v1001_v13 = vld [vmem:[#allocation5 + $0x4] sm:$0xf]  ;;  %v836_v14 = vor.u32 %v1002_v12, %v835_v11  ;;  %v837_v15 = vld [vmem:[#allocation5 + $0x8] sm:$0xf0]  ;;  %v899_v16 = vld [vmem:[#allocation5 + $0x80] sm:$0xf]  ;;  %v301_v1 = vsel %vm298_vm2, %v299_v9, %v300_v8 }
  0x48   : > { %v1018_v17 = vld [vmem:[#allocation5 + $0x84] sm:$0xf0]  ;;  %v840_v18 = vor.u32 %v1001_v13, %v837_v15  ;;  %v1032_v0 = vld [vmem:[#allocation8 + $0x38] sm:$0xff]  ;;  %v1039_v21 = vld [vmem:[#allocation8 + $0x70] sm:$0xff]  ;;  %v304_v26 = vsel %vm298_vm2, 0.0, %v299_v9  ;;  %s1041_s23 = sshll.u32 %s1389_s22, 4 }
  0x49   : > { %496 = vmatpush.bf16.msra.mxu1 %v908_v10  ;;  %v900_v19 = vor.u32 %v1018_v17, %v899_v16  ;;  %v1040_v20 = vld [vmem:[#allocation8 + $0x78] sm:$0xff]  ;;  %v1031_v22 = vld [vmem:[#allocation8 + $0x30] sm:$0xff]  ;;  %v1029_v24 = vld [vmem:[#allocation8 + $0x20] sm:$0xff]  ;;  %s712_s6 = scalar_lea.hbm %s1560_s5, %s1041_s23  ;;  %s292_s15 = scalar_lea.vmem [#allocation10], %s828_s11 }
  0x4a   : > { %480 = vmatpush.bf16.msra.mxu0 %v860_v48  ;;  %525 = vmatpush.bf16.msra.mxu3 %v904_v52  ;;  %v1038_v32 = vld [vmem:[#allocation8 + $0x68] sm:$0xff]  ;;  %v1028_v33 = vld [vmem:[#allocation8 + $0x18] sm:$0xff]  ;;  %v1037_v34 = vld [vmem:[#allocation8 + $0x60] sm:$0xff]  ;;  %s713_s7 = sshll.u32 %s292_s15, 4  ;;  %s715_s16 = sshll.u32 %s712_s6, 4  ;;  %s714_s7 = int_to_ptr.vmem [resolvable:$true] %s713_s7  ;;  %s716_s16 = int_to_ptr.hbm [resolvable:$true] %s715_s16 }
  0x4b   : > { %508 = vmatpush.bf16.msra.mxu2 %v864_v49  ;;  %v1027_v35 = vld [vmem:[#allocation8 + $0x10] sm:$0xff]  ;;  %v1036_v36 = vld [vmem:[#allocation8 + $0x58] sm:$0xff]  ;;  %v1026_v37 = vld [vmem:[#allocation8 + $0x8] sm:$0xff]  ;;  %s701_s22 = scalar_lea.sflag [#allocation4], %s1483_s26  ;;  %s1266_s17 = sshra.s32 %s716_s16, 4  ;;  %s1267_s17 = int_to_ptr.hbm [resolvable:$true] %s1266_s17 }
  0x4c   : > { %v1035_v38 = vld [vmem:[#allocation8 + $0x50] sm:$0xff]  ;;  %v1025_v39 = vld [vmem:[#allocation8] sm:$0xff]  ;;  %v1034_v40 = vld [vmem:[#allocation8 + $0x48] sm:$0xff]  ;;  %s1268_s13 = scalar_lea.hbm %s1267_s17, 16  ;;  %s1272_s14 = scalar_lea.hbm %s1560_s5, 32 }
  0x4d   : > { %930 = vmatmul.msk.bf16.vlgmr.msra.gmra.mxu3 %vm318_vm1, %v322_v5  ;;  %497 = vmatpush.bf16.msra.mxu1 %v900_v19  ;;  %v1033_v41 = vld [vmem:[#allocation8 + $0x40] sm:$0xff]  ;;  %v347_v42 = vld [vmem:[#allocation7] sm:$0x3]  ;;  %p1269_p1 = scmp.ne.s32.totalorder %s1267_s17, %s1268_s13  ;;  %p1273_p11 = scmp.lt.s32.totalorder %s1267_s17, %s1560_s5 }
  0x4e   : > { %481 = vmatpush.bf16.msra.mxu0 %v852_v55  ;;  %684 = vmatpush.bf16.msrb.mxu3 %v1040_v20  ;;  %v349_v45 = vperm.slane %v347_v42, 0  ;;  %v350_v49 = vperm.slane %v347_v42, 1  ;;  %v1131_v6 = vld [vmem:[%s1559_s4] ss:$0 sm:$0xff]  ;;  %p1274_p9 = scmp.lt.s32.totalorder %s1272_s14, %s1268_s13 }
  0x4f   : > { %509 = vmatpush.bf16.msra.mxu2 %v856_v56  ;;  %p1270_p4 = pnand %p1269_p1, %p1453_p3 }
  0x50   : > { %929 = vmatmul.msk.bf16.vlgmr.msra.gmra.mxu1 %vm318_vm1, %v322_v5  ;;  %p1275_p2 = por %p1274_p9, %p1273_p11 }
  0x51   : > { %670 = vmatpush.bf16.msrb.mxu1 %v1032_v0  ;;  %p1271_p8 = pneg %p1270_p4 }
  0x52   : > { %482 = vmatpush.bf16.msra.mxu0 %v844_v61  ;;  %685 = vmatpush.bf16.msrb.mxu3 %v1039_v21 }
  0x53   : > { %510 = vmatpush.bf16.msra.mxu2 %v848_v62  ;;  %p1276_p10 = pnand %p1275_p2, %p1271_p8 }
  0x55   : > { %671 = vmatpush.bf16.msrb.mxu1 %v1031_v22 }
  0x56   : > { %483 = vmatpush.bf16.msra.mxu0 %v836_v14  ;;  %686 = vmatpush.bf16.msrb.mxu3 %v1038_v32 }
  0x57   : > { %511 = vmatpush.bf16.msra.mxu2 %v840_v18 }
  0x59   : > { %672 = vmatpush.bf16.msrb.mxu1 %v1030_v23 }
  0x5a   : > { %687 = vmatpush.bf16.msrb.mxu3 %v1037_v34 }
  0x5d   : > { %673 = vmatpush.bf16.msrb.mxu1 %v1029_v24 }
  0x5e   : > { %688 = vmatpush.bf16.msrb.mxu3 %v1036_v36 }
  0x61   : > { %674 = vmatpush.bf16.msrb.mxu1 %v1028_v33 }
  0x62   : > { %689 = vmatpush.bf16.msrb.mxu3 %v1035_v38 }
  0x65   : > { %675 = vmatpush.bf16.msrb.mxu1 %v1027_v35 }
  0x66   : > { %690 = vmatpush.bf16.msrb.mxu3 %v1034_v40 }
  0x69   : > { %676 = vmatpush.bf16.msrb.mxu1 %v1026_v37 }
  0x6a   : > { %691 = vmatpush.bf16.msrb.mxu3 %v1033_v41 }
  0x6d   : > { %677 = vmatpush.bf16.msrb.mxu1 %v1025_v39 }
  0xab   : > { %v1128_v25 = vpop.permute.xlu0 %1127 }
  0xac   : > { %v1130_v27 = vunpack.i.h.bf16 %v1128_v25  ;;  %v1129_v28 = vunpack.i.l.bf16 %v1128_v25 }
  0xae   : > { %v319_v29 = vsel %vm318_vm1, %v304_v26, %v1129_v28  ;;  %v320_v30 = vsel %vm318_vm1, %v301_v1, %v1130_v27 }
  0xaf   : > { %v321_v31 = vpack.c.bf16 %v320_v30, %v319_v29 }
  0xb1   : > { %484 = vmatmul.bf16.vlgmr.msra.gmra.mxu0 %v321_v31  ;;  %512 = vmatmul.bf16.vlgmr.msra.gmra.mxu2 %v321_v31 }
  0xcd   : > { %v499_v43 = vpop.f32.mrf.mxu1 }
  0xd0   : > { %v527_v47 = vpop.f32.mrf.mxu3 }
  0xd5   : > { %v501_v51 = vpop.f32.mrf.mxu1 }
  0xd8   : > { %v529_v62 = vpop.f32.mrf.mxu3 }
 0x12e   : > { %v485_v44 = vpop.f32.mrf.mxu0 }
 0x12f   : > { %v486_v46 = vadd.f32 %v485_v44, %v349_v45 }
 0x131   : > { %v500_v52 = vadd.f32 %v499_v43, %v486_v46 }
 0x133   : > { %v532_v56 = vmax.f32 %v500_v52, 0.0 }
 0x134   : > { %v513_v48 = vpop.f32.mrf.mxu2 }
 0x135   : > { %v514_v54 = vadd.f32 %v513_v48, %v350_v49 }
 0x136   : > { %v487_v50 = vpop.f32.mrf.mxu0 }
 0x137   : > { %v488_v53 = vadd.f32 %v487_v50, %v349_v45  ;;  %v528_v59 = vadd.f32 %v527_v47, %v514_v54 }
 0x139   : > { %v502_v55 = vadd.f32 %v501_v51, %v488_v53  ;;  %v533_v2 = vmax.f32 %v528_v59, 0.0 }
 0x13b   : > { %v534_v57 = vmax.f32 %v502_v55, 0.0 }
 0x13c   : > { %v515_v58 = vpop.f32.mrf.mxu2 }
 0x13d   : > { %v536_v60 = vpack.c.bf16 %v534_v57, %v532_v56  ;;  %v516_v61 = vadd.f32 %v515_v58, %v350_v49 }
 0x13f   : > { %v530_v63 = vadd.f32 %v529_v62, %v516_v61  ;;  %678 = vmatmul.bf16.vlgmr.msrb.gmra.mxu1 %v536_v60 }
 0x141   : > { %v535_v3 = vmax.f32 %v530_v63, 0.0 }
 0x143   : > { %v537_v4 = vpack.c.bf16 %v535_v3, %v533_v2 }
 0x145   : > { %692 = vmatmul.bf16.vlgmr.msrb.gmra.mxu3 %v537_v4 }
 0x1bc   : > { %v679_v5 = vpop.f32.mrf.mxu1 }
 0x1bd   : > { %v680_v7 = vadd.f32 %v1131_v6, %v679_v5 }
 0x1c4   : > { %v681_v10 = vpop.f32.mrf.mxu1 }
 0x1c5   : > { %v682_v11 = vadd.f32 %v1131_v6, %v681_v10 }
 0x1c8   : > { %v693_v8 = vpop.f32.mrf.mxu3 }
 0x1c9   : > { %v694_v9 = vadd.f32 %v693_v8, %v680_v7 }
 0x1cb   : > { %698 = vst [vmem:[%s292_s15] sm:$0xff] %v694_v9 }
 0x1d0   : > { %v695_v12 = vpop.f32.mrf.mxu3 }
 0x1d1   : > { %v696_v13 = vadd.f32 %v695_v12, %v682_v11 }
 0x1d3   : > { %699 = vst [vmem:[%s292_s15 + $0x8] sm:$0xff] %v696_v13 }
 0x1d4   : > { %1279 = shalt.err (!%p1276_p10)
}
 0x1d5   : > { %s1336_s26 = smov 128   ;;  %s1337_s12 = smov 8  }
 0x1d6   : > { %1056 = dma.vmem_to_hbm [thread:$0]  (%p1453_p3), %s714_s7, 256, %s716_s16, %s701_s22, %s1336_s26, %s1336_s26, %s1337_s12  }
 0x1d7 PF: > { %s730_s23 = sand.u32 1, %s1314_s18   ;;  %p1569_p12 = scmp.ge.s32.totalorder %s1326_s21, 2 }
 0x1d8   : > { %s731_s27 = scalar_lea.sflag [#allocation4], %s730_s23 }
 0x1d9   : > { %p1073_p13 = pnand %p1569_p12, %p1403_p6 }
 0x1db   : > { %p1074_p0 = pneg %p1073_p13 }
 0x1dd   : > { %1309 = dma.done.wait (%p1074_p0), %s731_s27, 256  }
 0x1de   : > { %1311 = vsyncadd (%p1074_p0), %s731_s27, 4294967040  ;;  %p20_p5 = scmp.ge.s32.totalorder %s1440_s30, 4   ;;  %s1570_s18 = smov %s1318_s19 }
 0x1df   : > { %s1571_s19 = smov %s1322_s20  ;;  %s1572_s20 = smov %s1449_s9 }
 0x1e0   : > { %s1573_s21 = smov %s1440_s30  ;;  %22 = sbr.rel (!%p20_p5) target bundleno = 7 (0x7), region = 97 }
 0x1e5   :  { %737 = vsyncpa [#allocation3], 1 }
 0x1e6   :  { %739 = vsyncpa [#allocation3 + $0x1], 1 }
 0x1e7   :  { %740 = vsyncpa [#allocation6], 1 }
 0x1e8   :  { %741 = vsyncpa [#allocation9], 1 }
 0x1e9   :  { %742 = vsyncpa [#allocation4], 1 }
 0x1ea   :  { %744 = vsyncpa [#allocation4 + $0x1], 1 }

</bundles_post_ra>
